<compile_context>
chip_gen: v7x
topology: tpu7x:2x2x1
jax: 0.10.0
libtpu: 0.0.40
codegen_flags: <defaults>
</compile_context>

<pallas_src>
import functools

import jax
import jax.numpy as jnp
from jax import lax
from jax.experimental import pallas as pl
from jax.experimental.pallas import tpu as pltpu

_PD_EPS = 1e-6          # torch.nn.functional.pairwise_distance default eps
_SQ_EPS = 1e-8          # eps under the outer sqrt of dist_func
_CLAMP_MAX = 10.0
_SMALL_PROBLEM_BYTES = 1 << 20   # below this, skip pallas_call entirely


def _triplet_ratio_block_kernel(a_ref, p_ref, n_ref, o_ref, *,
                                n_rows, block_rows, d, k, mask_rows):
    # Upcast the native-dtype (e.g. bf16) tiles to f32 in VMEM (cheap VALU, hidden
    # under DMA); HBM traffic stays at the source dtype width.
    a = a_ref[...].astype(jnp.float32)
    p = p_ref[...].astype(jnp.float32)
    n = n_ref[...].astype(jnp.float32)

    sq_ap = (a - p + _PD_EPS) ** 2
    sq_an = (a - n + _PD_EPS) ** 2

    if k == 1:
        # Plain per-row reduce over the feature (lane) dim.
        ss_ap = jnp.sum(sq_ap, axis=-1, keepdims=True)       # (tb, 1)
        ss_an = jnp.sum(sq_an, axis=-1, keepdims=True)
    else:
        # Lane-packed layout: each row of the block holds k original rows of width d.
        # Segment-sum via a tiny 0/1 matmul (MXU slot, free at the memory roofline).
        w = k * d
        lane = lax.broadcasted_iota(jnp.int32, (w, k), 0)
        col = lax.broadcasted_iota(jnp.int32, (w, k), 1)
        seg = ((lane >= col * d) & (lane < (col + 1) * d)).astype(jnp.float32)
        dot_dims = (((1,), (0,)), ((), ()))
        ss_ap = lax.dot_general(sq_ap, seg, dot_dims,
                                preferred_element_type=jnp.float32,
                                precision=lax.Precision.HIGHEST)   # (tb, k)
        ss_an = lax.dot_general(sq_an, seg, dot_dims,
                                preferred_element_type=jnp.float32,
                                precision=lax.Precision.HIGHEST)

    # dist = sqrt( ||x1-x2+eps||_2 + 1e-8 ), clamped to max=10.
    pos = jnp.minimum(jnp.sqrt(jnp.sqrt(ss_ap) + _SQ_EPS), _CLAMP_MAX)
    neg = jnp.minimum(jnp.sqrt(jnp.sqrt(ss_an) + _SQ_EPS), _CLAMP_MAX)

    # exp(pos)/(exp(pos)+exp(neg)) == sigmoid(pos - neg): single EUP transcendental.
    ratio = jax.nn.sigmoid(pos - neg)                         # (tb, 1) or (tb, k)

    if mask_rows:
        # Select AFTER the transcendental so NaN from padded/garbage rows is dropped.
        row = (pl.program_id(0) * block_rows
               + lax.broadcasted_iota(jnp.int32, ratio.shape, 0))
        ratio = jnp.where(row < n_rows, ratio, 0.0)

    block_sum = jnp.sum(ratio)

    # Lane/sublane-aligned (8,128) partial-sum tile: value at [0,0], zeros elsewhere.
    r = lax.broadcasted_iota(jnp.int32, (8, 128), 0)
    c = lax.broadcasted_iota(jnp.int32, (8, 128), 1)
    o_ref[...] = jnp.where((r == 0) & (c == 0), block_sum, 0.0)


def _vmem_config():
    """(block-bytes budget, vmem_limit_bytes) chosen per TPU generation."""
    try:
        kind = jax.devices()[0].device_kind.lower()
    except Exception:  # pragma: no cover - CPU interpret / unknown backends
        kind = ""
    if ("v6" in kind) or ("v7" in kind):
        # 32 MiB scoped default on v6e/v7x (and well within v7x's 64 MiB physical).
        return 26 << 20, 32 << 20
    # v5e and older/unknown: 16 MiB scoped default.
    return 12 << 20, 16 << 20


def _choose_block_rows(n_rows, width, itemsize, budget_bytes):
    # 3 inputs x 2 pipeline buffers x rows x width x itemsize under the VMEM budget.
    per_row = 3 * 2 * width * itemsize
    rows = budget_bytes // per_row
    rows = max(8, (rows // 8) * 8)
    if rows >= n_rows:
        return n_rows
    return rows


def triplet_loss_ratio(anchor, positive, negative, *, block_rows=None,
                       force_kernel=False):
    """anchor/positive/negative: (B, D) arrays (any float dtype). Returns f32 loss."""
    B, D = anchor.shape
    itemsize = jnp.dtype(anchor.dtype).itemsize

    # Small-problem fast path: custom-call + per-step overhead dominates; XLA fuses
    # the reference into a handful of VPU ops.
    if (not force_kernel) and 3 * B * D * itemsize < _SMALL_PROBLEM_BYTES:
        return triplet_loss_ratio_ref(anchor, positive, negative)

    # Lane packing: for small D, pack k = 128//D rows per lane-row so the VPU works
    # on full 128-lane vregs.  Pure metadata reshape in HBM (contiguous, free).
    if D < 128 and 128 % D == 0 and B % (128 // D) == 0:
        k = 128 // D
    else:
        k = 1
    n_rows = B // k
    w = k * D
    if k > 1:
        anchor = anchor.reshape(n_rows, w)
        positive = positive.reshape(n_rows, w)
        negative = negative.reshape(n_rows, w)

    budget_bytes, vmem_limit = _vmem_config()
    tb = block_rows if block_rows is not None else _choose_block_rows(
        n_rows, w, itemsize, budget_bytes)
    if tb >= n_rows:
        tb = n_rows                          # single block: full-extent dims allowed
    else:
        tb = max(8, (tb // 8) * 8)           # tiled: keep sublane dim a multiple of 8
    grid = pl.cdiv(n_rows, tb)
    mask_rows = (grid * tb != n_rows)

    kernel = functools.partial(
        _triplet_ratio_block_kernel,
        n_rows=n_rows, block_rows=tb, d=D, k=k, mask_rows=mask_rows)
    in_spec = pl.BlockSpec((tb, w), lambda i: (i, 0))

    partials = pl.pallas_call(
        kernel,
        out_shape=jax.ShapeDtypeStruct((grid * 8, 128), jnp.float32),
        grid=(grid,),
        in_specs=[in_spec, in_spec, in_spec],
        out_specs=pl.BlockSpec((8, 128), lambda i: (i, 0)),
        compiler_params=pltpu.CompilerParams(
            dimension_semantics=("parallel",),
            vmem_limit_bytes=vmem_limit),
    )(anchor, positive, negative)

    return jnp.sum(partials) / jnp.float32(B)


def triplet_loss_ratio_ref(anchor, positive, negative):
    """Pure-JAX reference mirroring the PyTorch module (swap=False), f32 compute."""
    anchor = anchor.astype(jnp.float32)
    positive = positive.astype(jnp.float32)
    negative = negative.astype(jnp.float32)

    def dist(x1, x2):
        pd = jnp.sqrt(jnp.sum((x1 - x2 + _PD_EPS) ** 2, axis=-1))
        return jnp.sqrt(pd + _SQ_EPS)

    pos = jnp.minimum(dist(anchor, positive), _CLAMP_MAX)
    neg = jnp.minimum(dist(anchor, negative), _CLAMP_MAX)
    ratio = jnp.exp(pos) / (jnp.exp(pos) + jnp.exp(neg))
    return jnp.mean(ratio)


if __name__ == "__main__":
    key = jax.random.PRNGKey(0)
    k1, k2, k3 = jax.random.split(key, 3)

    # 1) Module-default tiny shape (batch=8, hidden=32): small-problem fast path.
    B, D = 8, 32
    a = jax.random.normal(k1, (B, D), dtype=jnp.float32)
    p = jax.random.normal(k2, (B, D), dtype=jnp.float32)
    n = jax.random.normal(k3, (B, D), dtype=jnp.float32)
    loss = triplet_loss_ratio(a, p, n)
    jax.block_until_ready(loss)
    ref = triplet_loss_ratio_ref(a, p, n)
    assert jnp.allclose(loss, ref, atol=1e-5, rtol=1e-5), (loss, ref)

    # 2) Same tiny shape forced through the Pallas kernel (lane-packed, single block).
    loss_k = triplet_loss_ratio(a, p, n, force_kernel=True)
    jax.block_until_ready(loss_k)
    assert jnp.allclose(loss_k, ref, atol=2e-3, rtol=0), (loss_k, ref)

    # 3) Gridded + masked + lane-packed path (D=32 -> k=4), f32.
    B2, D2 = 520, 32
    a2 = jax.random.normal(k1, (B2, D2), dtype=jnp.float32)
    p2 = jax.random.normal(k2, (B2, D2), dtype=jnp.float32)
    n2 = jax.random.normal(k3, (B2, D2), dtype=jnp.float32)
    loss2 = triplet_loss_ratio(a2, p2, n2, block_rows=32, force_kernel=True)
    jax.block_until_ready(loss2)
    ref2 = triplet_loss_ratio_ref(a2, p2, n2)
    assert jnp.allclose(loss2, ref2, atol=2e-3, rtol=0), (loss2, ref2)

    # 4) Unpacked path (D >= 128), gridded + masked, f32.
    B3, D3 = 260, 256
    a3 = jax.random.normal(k1, (B3, D3), dtype=jnp.float32)
    p3 = jax.random.normal(k2, (B3, D3), dtype=jnp.float32)
    n3 = jax.random.normal(k3, (B3, D3), dtype=jnp.float32)
    loss3 = triplet_loss_ratio(a3, p3, n3, block_rows=64, force_kernel=True)
    jax.block_until_ready(loss3)
    ref3 = triplet_loss_ratio_ref(a3, p3, n3)
    assert jnp.allclose(loss3, ref3, atol=1e-5, rtol=1e-5), (loss3, ref3)

    # 5) Native bf16 inputs (no wrapper cast), lane-packed + masked.
    B4, D4 = 264, 32
    a4 = jax.random.normal(k1, (B4, D4), dtype=jnp.bfloat16)
    p4 = jax.random.normal(k2, (B4, D4), dtype=jnp.bfloat16)
    n4 = jax.random.normal(k3, (B4, D4), dtype=jnp.bfloat16)
    loss4 = triplet_loss_ratio(a4, p4, n4, block_rows=16, force_kernel=True)
    jax.block_until_ready(loss4)
    ref4 = triplet_loss_ratio_ref(a4, p4, n4)
    assert jnp.allclose(loss4, ref4, atol=2e-3, rtol=0), (loss4, ref4)

    print("KERNEL_OK")
</pallas_src>

<mosaic_0001>
module attributes {stable_mosaic.version = 11 : i64} {
  func.func @_triplet_ratio_block_kernel(%arg0: i32, %arg1: memref<2x128xf32, #tpu.memory_space<vmem>>, %arg2: memref<2x128xf32, #tpu.memory_space<vmem>>, %arg3: memref<2x128xf32, #tpu.memory_space<vmem>>, %arg4: memref<8x128xf32, #tpu.memory_space<vmem>>) attributes {dimension_semantics = [#tpu.dimension_semantics<parallel>], iteration_bounds = array<i64: 1>, scalar_prefetch = 0 : i64, scratch_operands = 0 : i64, tpu.core_type = #tpu.core_type<tc>, window_params = [{transform_indices = @transform_0, window_bounds = array<i64: 2, 128>}, {transform_indices = @transform_1, window_bounds = array<i64: 2, 128>}, {transform_indices = @transform_2, window_bounds = array<i64: 2, 128>}, {transform_indices = @transform_3, window_bounds = array<i64: 8, 128>}]} {
    %c0 = arith.constant 0 : index
    %c0_0 = arith.constant 0 : index
    %0 = vector.load %arg1[%c0, %c0_0] : memref<2x128xf32, #tpu.memory_space<vmem>>, vector<2x128xf32>
    %c0_1 = arith.constant 0 : index
    %c0_2 = arith.constant 0 : index
    %1 = vector.load %arg2[%c0_1, %c0_2] : memref<2x128xf32, #tpu.memory_space<vmem>>, vector<2x128xf32>
    %c0_3 = arith.constant 0 : index
    %c0_4 = arith.constant 0 : index
    %2 = vector.load %arg3[%c0_3, %c0_4] : memref<2x128xf32, #tpu.memory_space<vmem>>, vector<2x128xf32>
    %3 = arith.subf %0, %1 : vector<2x128xf32>
    %cst = arith.constant 9.99999997E-7 : f32
    %4 = vector.broadcast %cst : f32 to vector<2x128xf32>
    %5 = arith.addf %3, %4 : vector<2x128xf32>
    %6 = arith.mulf %5, %5 : vector<2x128xf32>
    %7 = arith.subf %0, %2 : vector<2x128xf32>
    %cst_5 = arith.constant 9.99999997E-7 : f32
    %8 = vector.broadcast %cst_5 : f32 to vector<2x128xf32>
    %9 = arith.addf %7, %8 : vector<2x128xf32>
    %10 = arith.mulf %9, %9 : vector<2x128xf32>
    %11 = tpu.iota {dimensions = array<i32: 0>} : vector<128x4xi32>
    %12 = tpu.iota {dimensions = array<i32: 1>} : vector<128x4xi32>
    %c32_i32 = arith.constant 32 : i32
    %13 = vector.broadcast %c32_i32 : i32 to vector<128x4xi32>
    %14 = arith.muli %12, %13 : vector<128x4xi32>
    %15 = arith.cmpi sge, %11, %14 : vector<128x4xi32>
    %c1_i32 = arith.constant 1 : i32
    %16 = vector.broadcast %c1_i32 : i32 to vector<128x4xi32>
    %17 = arith.addi %12, %16 : vector<128x4xi32>
    %c32_i32_6 = arith.constant 32 : i32
    %18 = vector.broadcast %c32_i32_6 : i32 to vector<128x4xi32>
    %19 = arith.muli %17, %18 : vector<128x4xi32>
    %20 = arith.cmpi slt, %11, %19 : vector<128x4xi32>
    %21 = arith.andi %15, %20 : vector<128x4xi1>
    %22 = arith.extui %21 : vector<128x4xi1> to vector<128x4xi32>
    %23 = arith.sitofp %22 : vector<128x4xi32> to vector<128x4xf32>
    %cst_7 = arith.constant dense<0.000000e+00> : vector<2x4xf32>
    %24 = tpu.matmul %6, %23, %cst_7 {dimension_numbers = #tpu.dot_dimension_numbers<[1], [0], [0], [1], [0, 0, 1, 1], [], []>, precision = #tpu.contract_precision<fp32>} : vector<2x128xf32>, vector<128x4xf32>, vector<2x4xf32> -> vector<2x4xf32>
    %cst_8 = arith.constant dense<0.000000e+00> : vector<2x4xf32>
    %25 = tpu.matmul %10, %23, %cst_8 {dimension_numbers = #tpu.dot_dimension_numbers<[1], [0], [0], [1], [0, 0, 1, 1], [], []>, precision = #tpu.contract_precision<fp32>} : vector<2x128xf32>, vector<128x4xf32>, vector<2x4xf32> -> vector<2x4xf32>
    %26 = math.sqrt %24 : vector<2x4xf32>
    %cst_9 = arith.constant 9.99999993E-9 : f32
    %27 = vector.broadcast %cst_9 : f32 to vector<2x4xf32>
    %28 = arith.addf %26, %27 : vector<2x4xf32>
    %29 = math.sqrt %28 : vector<2x4xf32>
    %cst_10 = arith.constant 1.000000e+01 : f32
    %30 = vector.broadcast %cst_10 : f32 to vector<2x4xf32>
    %31 = arith.minimumf %29, %30 : vector<2x4xf32>
    %32 = math.sqrt %25 : vector<2x4xf32>
    %cst_11 = arith.constant 9.99999993E-9 : f32
    %33 = vector.broadcast %cst_11 : f32 to vector<2x4xf32>
    %34 = arith.addf %32, %33 : vector<2x4xf32>
    %35 = math.sqrt %34 : vector<2x4xf32>
    %cst_12 = arith.constant 1.000000e+01 : f32
    %36 = vector.broadcast %cst_12 : f32 to vector<2x4xf32>
    %37 = arith.minimumf %35, %36 : vector<2x4xf32>
    %38 = arith.subf %31, %37 : vector<2x4xf32>
    %39 = arith.negf %38 : vector<2x4xf32>
    %40 = math.exp %39 : vector<2x4xf32>
    %cst_13 = arith.constant 1.000000e+00 : f32
    %41 = vector.broadcast %cst_13 : f32 to vector<2x4xf32>
    %42 = arith.addf %41, %40 : vector<2x4xf32>
    %43 = arith.divf %41, %42 : vector<2x4xf32>
    %44 = vector.shape_cast %43 : vector<2x4xf32> to vector<1x2x4xf32>
    %cst_14 = arith.constant dense<0.000000e+00> : vector<1xf32>
    %45 = vector.multi_reduction <add>, %44, %cst_14 [1, 2] : vector<1x2x4xf32> to vector<1xf32>
    %46 = vector.shape_cast %45 : vector<1xf32> to vector<1x1x1xf32>
    %47 = vector.extract %46[0, 0, 0] : f32 from vector<1x1x1xf32>
    %48 = tpu.iota {dimensions = array<i32: 0>} : vector<8x128xi32>
    %49 = tpu.iota {dimensions = array<i32: 1>} : vector<8x128xi32>
    %c0_i32 = arith.constant 0 : i32
    %50 = vector.broadcast %c0_i32 : i32 to vector<8x128xi32>
    %51 = arith.cmpi eq, %48, %50 : vector<8x128xi32>
    %c0_i32_15 = arith.constant 0 : i32
    %52 = vector.broadcast %c0_i32_15 : i32 to vector<8x128xi32>
    %53 = arith.cmpi eq, %49, %52 : vector<8x128xi32>
    %54 = arith.andi %51, %53 : vector<8x128xi1>
    %cst_16 = arith.constant 0.000000e+00 : f32
    %55 = vector.broadcast %47 : f32 to vector<8x128xf32>
    %56 = vector.broadcast %cst_16 : f32 to vector<8x128xf32>
    %57 = arith.select %54, %55, %56 : vector<8x128xi1>, vector<8x128xf32>
    %c0_17 = arith.constant 0 : index
    %c0_18 = arith.constant 0 : index
    %58 = vector.load %arg4[%c0_17, %c0_18] : memref<8x128xf32, #tpu.memory_space<vmem>>, vector<8x128xf32>
    tpu.vector_store %arg4[%c0_17, %c0_18], %57 {strides = array<i32>} : memref<8x128xf32, #tpu.memory_space<vmem>>, vector<8x128xf32>,
    return
  }
  func.func @transform_0(%arg0: i32) -> (i32, i32) {
    %c0_i32 = arith.constant 0 : i32
    %c0_i32_0 = arith.constant 0 : i32
    return %arg0, %c0_i32 : i32, i32
  }
  func.func @transform_1(%arg0: i32) -> (i32, i32) {
    %c0_i32 = arith.constant 0 : i32
    %c0_i32_0 = arith.constant 0 : i32
    return %arg0, %c0_i32 : i32, i32
  }
  func.func @transform_2(%arg0: i32) -> (i32, i32) {
    %c0_i32 = arith.constant 0 : i32
    %c0_i32_0 = arith.constant 0 : i32
    return %arg0, %c0_i32 : i32, i32
  }
  func.func @transform_3(%arg0: i32) -> (i32, i32) {
    %c0_i32 = arith.constant 0 : i32
    %c0_i32_0 = arith.constant 0 : i32
    return %arg0, %c0_i32 : i32, i32
  }
}

</mosaic_0001>

<bundles_post_ra>
// kernel: tpu_custom_call.1
= control target key start
LH: loop header
LB: loop body
LE: loop exit
PB: predicated region body
PF: predicated region fallthrough
CT: control target
= control target key end

     0   :  { %8 = vsyncpa [#allocation3], 0  ;;  %s3349_s0 = inlined_call_operand.hbm [shape: f32[2,128], index: 0, kind: input, shape index: {}]   ;;  %s3350_s1 = inlined_call_operand.vmem [shape: f32[2,128], index: 1, kind: input, shape index: {}]   ;;  %s3351_s2 = inlined_call_operand.vmem [shape: f32[2,128], index: 2, kind: input, shape index: {}]   ;;  %s3352_s3 = inlined_call_operand.hbm [shape: f32[8,128], index: 3, kind: output, shape index: {}]  }
   0x1   :  { %9 = vsyncpa [#allocation4], 0  ;;  %s2604_s12 = smov [#allocation2]   ;;  %s2556_s16 = scalar_lea.hbm %s3349_s0, 32 }
   0x2   :  { %s16_s13 = sshll.u32 %s2604_s12, 4  ;;  %p2557_p0 = scmp.ne.s32.totalorder %s3349_s0, %s2556_s16  ;;  %s17_s13 = int_to_ptr.vmem [resolvable:$true] %s16_s13 }
   0x3   :  { %p2560_p1 = scmp.lt.u32.totalorder %s2556_s16, %s3349_s0 }
   0x5   :  { %p2562_p2 = pnand %p2560_p1, %p2557_p0 }
   0x7   :  { %2565 = shalt.err (!%p2562_p2)
}
   0x8   :  { %s2566_s21 = scalar_lea.vmem %s17_s13, 32  ;;  %p2571_p4 = scmp.lt.s32.totalorder %s17_s13, %s17_s13 }
   0x9   :  { %p2567_p3 = scmp.ne.s32.totalorder %s17_s13, %s2566_s21  ;;  %p2572_p5 = scmp.lt.s32.totalorder %s2566_s21, %s2566_s21 }
   0xb   :  { %p2573_p6 = por %p2572_p5, %p2571_p4 }
   0xd   :  { %p2574_p7 = pnand %p2573_p6, %p2567_p3 }
   0xf   :  { %2577 = shalt.err (!%p2574_p7)
}
  0x10   :  { %19 = dma.hbm_to_vmem [thread:$0]  %s3349_s0, 32, %s17_s13, [#allocation3]   ;;  %v36_v0 = vlaneseq }
  0x11   :  { %2600 = dma.done.wait [#allocation3], 32  }
  0x12   :  { %2601 = vsyncadd [#allocation3], 4294967264  ;;  %v2605_v1 = vmov 0.0|0.0   ;;  %v2644_v2 = vshrl.u32 %v36_v0, 7  ;;  %v2646_v3 = vand.u32 127, %v36_v0  ;;  %vm3353_vm0 = vmmov 0  }
  0x13   :  { %2228 = vmatprep.subr.bf16.mxu0 %v2605_v1  ;;  %2372 = vmatprep.subr.bf16.mxu1 %v2605_v1  ;;  %v2607_v4 = vmov 0.0   ;;  %v2608_v17 = vmov 1.0|1.0   ;;  %v27_v21 = vld [vmem:[#allocation2] sm:$0x3]  ;;  %v3375_v30 = vmov 0 }
  0x14   :  { %1840 = vmatprep.mubr.msk.f32.mxu0 %vm3353_vm0, %v2607_v4  ;;  %2050 = vmatprep.mubr.msk.f32.mxu1 %vm3353_vm0, %v2607_v4  ;;  %v38_v5 = vadd.s32 8, %v2644_v2  ;;  %v2654_v6 = vmul.u32 32, %v2646_v3  ;;  %v72_v7 = vadd.s32 1, %v2646_v3  ;;  %v39_v8 = vadd.s32 16, %v2644_v2  ;;  %v28_v22 = vld [vmem:[%s3350_s1] sm:$0x3] }
  0x15   :  { %v40_v10 = vadd.s32 24, %v2644_v2  ;;  %v41_v11 = vadd.s32 32, %v2644_v2  ;;  %v42_v13 = vadd.s32 40, %v2644_v2  ;;  %v43_v16 = vadd.s32 48, %v2644_v2  ;;  %v29_v34 = vld [vmem:[%s3351_s2] sm:$0x3] }
  0x16   :  { %vm56_vm1 = vcmp.ge.s32.totalorder %v2644_v2, %v2654_v6  ;;  %v2660_v9 = vmul.u32 32, %v72_v7  ;;  %vm57_vm2 = vcmp.ge.s32.totalorder %v38_v5, %v2654_v6  ;;  %vm58_vm6 = vcmp.ge.s32.totalorder %v39_v8, %v2654_v6  ;;  %s2609_s2 = smov [#allocation5]  }
  0x17   :  { %vm59_vm9 = vcmp.ge.s32.totalorder %v40_v10, %v2654_v6  ;;  %vm60_vm13 = vcmp.ge.s32.totalorder %v41_v11, %v2654_v6  ;;  %v44_v19 = vadd.s32 56, %v2644_v2  ;;  %v45_v24 = vadd.s32 64, %v2644_v2  ;;  %s1482_s26 = sshll.u32 %s2609_s2, 4  ;;  %s1483_s26 = int_to_ptr.vmem [resolvable:$true] %s1482_s26 }
  0x18   :  { %vm74_vm3 = vcmp.lt.s32.totalorder %v2644_v2, %v2660_v9  ;;  %vm75_vm4 = vcmp.lt.s32.totalorder %v38_v5, %v2660_v9  ;;  %vm76_vm7 = vcmp.lt.s32.totalorder %v39_v8, %v2660_v9  ;;  %vm77_vm10 = vcmp.lt.s32.totalorder %v40_v10, %v2660_v9  ;;  %s2578_s28 = scalar_lea.vmem %s1483_s26, 128  ;;  %p2583_p9 = scmp.lt.s32.totalorder %s1483_s26, %s1483_s26 }
  0x19   :  { %vm2668_vm5 = vmand %vm56_vm1, %vm74_vm3  ;;  %vm78_vm14 = vcmp.lt.s32.totalorder %v41_v11, %v2660_v9  ;;  %vm61_vm1 = vcmp.ge.s32.totalorder %v42_v13, %v2654_v6  ;;  %v46_v26 = vadd.s32 72, %v2644_v2  ;;  %v30_v28 = vsub.f32 %v27_v21, %v28_v22  ;;  %p2579_p8 = scmp.ne.s32.totalorder %s1483_s26, %s2578_s28  ;;  %p2584_p10 = scmp.lt.s32.totalorder %s2578_s28, %s2578_s28 }
  0x1a   :  { %vm2675_vm8 = vmand %vm57_vm2, %vm75_vm4  ;;  %vm79_vm2 = vcmp.lt.s32.totalorder %v42_v13, %v2660_v9  ;;  %v1491_v29 = vsel %vm2668_vm5, 1.0, %v2607_v4  ;;  %v47_v31 = vadd.s32 80, %v2644_v2  ;;  %v48_v33 = vadd.s32 88, %v2644_v2 }
  0x1b   :  { %vm2685_vm11 = vmpackc.low %vm2675_vm8, %vm2668_vm5  ;;  %vm64_vm5 = vcmp.ge.s32.totalorder %v45_v24, %v2654_v6  ;;  %v1492_v35 = vsel %vm2675_vm8, 1.0, %v2607_v4  ;;  %v2775_v37 = vsub.f32 %v1491_v29, %v1491_v29  ;;  %v3381_v40 = vmov 0  ;;  %p2585_p11 = por %p2584_p10, %p2583_p9 }
  0x1c   :  { %2230 = vmatpush3.bf16.msk.msra.mxu0 %vm2685_vm11, %v2608_v17  ;;  %2374 = vmatpush3.bf16.msk.msra.mxu1 %vm2685_vm11, %v2608_v17  ;;  %vm2696_vm12 = vmand %vm58_vm6, %vm76_vm7  ;;  %vm62_vm6 = vcmp.ge.s32.totalorder %v43_v16, %v2654_v6  ;;  %vm80_vm7 = vcmp.lt.s32.totalorder %v43_v16, %v2660_v9  ;;  %v31_v41 = vadd.f32 1e-06, %v30_v28  ;;  %v49_v43 = vadd.s32 96, %v2644_v2 }
  0x1d   :  { %2231 = vmatprep.subr.bf16.mxu0 %v2605_v1  ;;  %2375 = vmatprep.subr.bf16.mxu1 %v2605_v1  ;;  %vm2705_vm15 = vmand %vm59_vm9, %vm77_vm10  ;;  %vm63_vm10 = vcmp.ge.s32.totalorder %v44_v19, %v2654_v6  ;;  %v1493_v38 = vsel %vm2696_vm12, 1.0, %v2607_v4  ;;  %v33_v44 = vsub.f32 %v27_v21, %v29_v34  ;;  %v50_v46 = vadd.s32 104, %v2644_v2  ;;  %p2586_p12 = pnand %p2585_p11, %p2579_p8 }
  0x1e   :  { %vm2718_vm3 = vmpackc.low %vm2705_vm15, %vm2696_vm12  ;;  %v1494_v39 = vsel %vm2705_vm15, 1.0, %v2607_v4  ;;  %vm66_vm15 = vcmp.ge.s32.totalorder %v47_v31, %v2654_v6  ;;  %v32_v47 = vmul.f32 %v31_v41, %v31_v41  ;;  %v2821_v48 = vsub.f32 %v1492_v35, %v1492_v35 }
  0x1f   :  { %vm2723_vm4 = vmand %vm60_vm13, %vm78_vm14  ;;  %vm81_vm13 = vcmp.lt.s32.totalorder %v44_v19, %v2660_v9  ;;  %v2823_v49 = vsub.f32 %v1493_v38, %v1493_v38  ;;  %v2825_v50 = vsub.f32 %v1494_v39, %v1494_v39  ;;  %v34_v52 = vadd.f32 1e-06, %v33_v44 }
  0x20   :  { %2233 = vmatpush3.bf16.msk.msra.mxu0 %vm2718_vm3, %v2608_v17  ;;  %2377 = vmatpush3.bf16.msk.msra.mxu1 %vm2718_vm3, %v2608_v17  ;;  %vm2736_vm9 = vmand %vm61_vm1, %vm79_vm2  ;;  %vm82_vm2 = vcmp.lt.s32.totalorder %v45_v24, %v2660_v9  ;;  %v1495_v53 = vsel %vm2723_vm4, 1.0, %v2607_v4  ;;  %v51_v55 = vadd.s32 112, %v2644_v2  ;;  %v52_v56 = vadd.s32 120, %v2644_v2 }
  0x21   :  { %2234 = vmatprep.subr.bf16.mxu0 %v2605_v1  ;;  %2378 = vmatprep.subr.bf16.mxu1 %v2605_v1  ;;  %vm2751_vm14 = vmpackc.low %vm2736_vm9, %vm2723_vm4  ;;  %v2854_v57 = vand.u32 4294901760, %v32_v47  ;;  %v1496_v58 = vsel %vm2736_vm9, 1.0, %v2607_v4  ;;  %v35_v60 = vmul.f32 %v34_v52, %v34_v52  ;;  %vm87_vm9 = vcmp.lt.s32.totalorder %v50_v46, %v2660_v9 }
  0x22   :  { %v3376_v30 = vsel %vm2751_vm14, 4294967295, %v3375_v30  ;;  %vm2756_vm1 = vmand %vm62_vm6, %vm80_vm7  ;;  %vm65_vm6 = vcmp.ge.s32.totalorder %v46_v26, %v2654_v6  ;;  %vm83_vm7 = vcmp.lt.s32.totalorder %v46_v26, %v2660_v9  ;;  %v232_v61 = vand.u32 4294901760, %v2775_v37 }
  0x23   :  { %vm2769_vm0 = vmand %vm63_vm10, %vm81_vm13  ;;  %vm84_vm10 = vcmp.lt.s32.totalorder %v47_v31, %v2660_v9  ;;  %v2874_v62 = vsub.f32 %v1495_v53, %v1495_v53  ;;  %v2885_v0 = vsub.f32 %v32_v47, %v2854_v57  ;;  %v239_v5 = vand.u32 4294901760, %v2821_v48 }
  0x24   :  { %2236 = vmatpush3.bf16.msk.msra.mxu0 %vm2751_vm14, %v2608_v17  ;;  %2380 = vmatpush3.bf16.msk.msra.mxu1 %vm2751_vm14, %v2608_v17  ;;  %vm2793_vm8 = vmpackc.low %vm2769_vm0, %vm2756_vm1  ;;  %v2888_v7 = vand.u32 4294901760, %v35_v60  ;;  %v2890_v8 = vsub.f32 %v1496_v58, %v1496_v58  ;;  %v1497_v10 = vsel %vm2756_vm1, 1.0, %v2607_v4  ;;  %v246_v12 = vand.u32 4294901760, %v2823_v49 }
  0x25   :  { %v3382_v40 = vsel %vm2793_vm8, 4294967295, %v3381_v40  ;;  %2237 = vmatprep.subr.bf16.mxu0 %v2605_v1  ;;  %2381 = vmatprep.subr.bf16.mxu1 %v2605_v1  ;;  %vm2803_vm12 = vmand %vm64_vm5, %vm82_vm2  ;;  %vm67_vm5 = vcmp.ge.s32.totalorder %v48_v33, %v2654_v6  ;;  %vm85_vm2 = vcmp.lt.s32.totalorder %v48_v33, %v2660_v9  ;;  %vm3397_vm1 = vcmp.ge.s32.totalorder %v50_v46, %v2654_v6 }
  0x26   :  { %vm2814_vm13 = vmand %vm65_vm6, %vm83_vm7  ;;  %v2922_v14 = vsub.f32 %v35_v60, %v2888_v7  ;;  %v253_v16 = vand.u32 4294901760, %v2825_v50  ;;  %v1498_v18 = vsel %vm2769_vm0, 1.0, %v2607_v4  ;;  %v1499_v19 = vsel %vm2803_vm12, 1.0, %v2607_v4 }
  0x27   :  { %vm2831_vm6 = vmpackc.low %vm2814_vm13, %vm2803_vm12  ;;  %v233_v20 = vsub.f32 %v2775_v37, %v232_v61  ;;  %v1500_v21 = vsel %vm2814_vm13, 1.0, %v2607_v4  ;;  %v221_v22 = vand.u32 4294901760, %v2885_v0  ;;  %v240_v24 = vsub.f32 %v2821_v48, %v239_v5 }
  0x28   :  { %2239 = vmatpush3.bf16.msk.msra.mxu0 %vm2793_vm8, %v2608_v17  ;;  %2383 = vmatpush3.bf16.msk.msra.mxu1 %vm2793_vm8, %v2608_v17  ;;  %vm2848_vm7 = vmand %vm66_vm15, %vm84_vm10  ;;  %vm68_vm15 = vcmp.ge.s32.totalorder %v49_v43, %v2654_v6  ;;  %vm86_vm10 = vcmp.lt.s32.totalorder %v49_v43, %v2660_v9  ;;  %vm70_vm8 = vcmp.ge.s32.totalorder %v51_v55, %v2654_v6  ;;  %v862_v25 = vand.u32 4294901760, %v2922_v14 }
  0x29   :  { %2240 = vmatprep.subr.bf16.mxu0 %v2605_v1  ;;  %2384 = vmatprep.subr.bf16.mxu1 %v2605_v1  ;;  %vm2865_vm4 = vmand %vm67_vm5, %vm85_vm2  ;;  %v247_v27 = vsub.f32 %v2823_v49, %v246_v12  ;;  %v2960_v28 = vsub.f32 %v1497_v10, %v1497_v10  ;;  %v1501_v29 = vsel %vm2848_vm7, 1.0, %v2607_v4  ;;  %v254_v32 = vsub.f32 %v2825_v50, %v253_v16 }
  0x2a   :  { %vm2880_vm5 = vmpackc.low %vm2865_vm4, %vm2848_vm7  ;;  %v260_v33 = vand.u32 4294901760, %v2874_v62  ;;  %v2979_v34 = vsub.f32 %v1498_v18, %v1498_v18  ;;  %v2981_v35 = vsub.f32 %v1499_v19, %v1499_v19  ;;  %v2983_v36 = vsub.f32 %v1500_v21, %v1500_v21 }
  0x2b   :  { %vm2903_vm2 = vmand %vm68_vm15, %vm86_vm10  ;;  %vm71_vm15 = vcmp.ge.s32.totalorder %v52_v56, %v2654_v6  ;;  %vm88_vm10 = vcmp.lt.s32.totalorder %v51_v55, %v2660_v9  ;;  %v267_v39 = vand.u32 4294901760, %v2890_v8  ;;  %v222_v41 = vsub.f32 %v2885_v0, %v221_v22 }
  0x2c   :  { %2242 = vmatpush3.bf16.msk.msra.mxu0 %vm2831_vm6, %v2608_v17  ;;  %2386 = vmatpush3.bf16.msk.msra.mxu1 %vm2831_vm6, %v2608_v17  ;;  %vm2915_vm14 = vmand %vm3397_vm1, %vm87_vm9  ;;  %vm89_vm9 = vcmp.lt.s32.totalorder %v52_v56, %v2660_v9  ;;  %v234_v42 = vand.u32 4294901760, %v233_v20  ;;  %v241_v43 = vand.u32 4294901760, %v240_v24  ;;  %v863_v44 = vsub.f32 %v2922_v14, %v862_v25 }
  0x2d   :  { %2243 = vmatprep.subr.bf16.mxu0 %v2605_v1  ;;  %2387 = vmatprep.subr.bf16.mxu1 %v2605_v1  ;;  %vm2953_vm0 = vmpackc.low %vm2915_vm14, %vm2903_vm2  ;;  %v1502_v6 = vsel %vm2865_vm4, 1.0, %v2607_v4  ;;  %v3003_v9 = vsub.f32 %v1501_v29, %v1501_v29  ;;  %v1503_v45 = vsel %vm2903_vm2, 1.0, %v2607_v4  ;;  %v248_v46 = vand.u32 4294901760, %v247_v27 }
  0x2e   :  { %vm2971_vm12 = vmand %vm70_vm8, %vm88_vm10  ;;  %v1504_v47 = vsel %vm2915_vm14, 1.0, %v2607_v4  ;;  %v255_v54 = vand.u32 4294901760, %v254_v32  ;;  %v261_v55 = vsub.f32 %v2874_v62, %v260_v33  ;;  %v268_v58 = vsub.f32 %v2890_v8, %v267_v39 }
  0x2f   :  { %vm2989_vm8 = vmand %vm71_vm15, %vm89_vm9  ;;  %v1505_v52 = vsel %vm2971_vm12, 1.0, %v2607_v4  ;;  %v274_v59 = vand.u32 4294901760, %v2960_v28  ;;  %v281_v60 = vand.u32 4294901760, %v2979_v34  ;;  %v3037_v10 = vsub.f32 %v1502_v6, %v1502_v6 }
  0x30   :  { %2245 = vmatpush3.bf16.msk.msra.mxu0 %vm2880_vm5, %v2608_v17  ;;  %2389 = vmatpush3.bf16.msk.msra.mxu1 %vm2880_vm5, %v2608_v17  ;;  %vm3026_vm13 = vmpackc.low %vm2989_vm8, %vm2971_vm12  ;;  %v1506_v56 = vsel %vm2989_vm8, 1.0, %v2607_v4  ;;  %v3039_v11 = vsub.f32 %v1503_v45, %v1503_v45  ;;  %v223_v13 = vand.u32 4294901760, %v222_v41  ;;  %v864_v18 = vand.u32 4294901760, %v863_v44 }
  0x31   :  { %2246 = vmatprep.subr.bf16.mxu0 %v2605_v1  ;;  %2390 = vmatprep.subr.bf16.mxu1 %v2605_v1  ;;  %v3041_v19 = vsub.f32 %v1504_v47, %v1504_v47  ;;  %v3046_v20 = vsub.f32 %v1505_v52, %v1505_v52  ;;  %v2253_v21 = vpack.c.bf16 %v241_v43, %v234_v42  ;;  %v262_v29 = vand.u32 4294901760, %v261_v55 }
  0x32   :  { %v3051_v24 = vsub.f32 %v1506_v56, %v1506_v56  ;;  %v2256_v27 = vpack.c.bf16 %v255_v54, %v248_v46  ;;  %v269_v31 = vand.u32 4294901760, %v268_v58  ;;  %v275_v32 = vsub.f32 %v2960_v28, %v274_v59 }
  0x33   :  { %v282_v38 = vsub.f32 %v2979_v34, %v281_v60  ;;  %v288_v41 = vand.u32 4294901760, %v2981_v35  ;;  %v295_v44 = vand.u32 4294901760, %v2983_v36  ;;  %v302_v42 = vand.u32 4294901760, %v3003_v9 }
  0x34   :  { %2248 = vmatpush3.bf16.msk.msra.mxu0 %vm2953_vm0, %v2608_v17  ;;  %2392 = vmatpush3.bf16.msk.msra.mxu1 %vm2953_vm0, %v2608_v17  ;;  %v309_v43 = vand.u32 4294901760, %v3037_v10  ;;  %v316_v6 = vand.u32 4294901760, %v3039_v11  ;;  %v323_v45 = vand.u32 4294901760, %v3041_v19  ;;  %v330_v46 = vand.u32 4294901760, %v3046_v20 }
  0x35   :  { %2249 = vmatprep.subr.bf16.mxu0 %v2605_v1  ;;  %2393 = vmatprep.subr.bf16.mxu1 %v2605_v1  ;;  %v3068_v47 = vpack.c.bf16 %v239_v5, %v232_v61  ;;  %v3074_v52 = vpack.c.bf16 %v253_v16, %v246_v12  ;;  %v337_v54 = vand.u32 4294901760, %v3051_v24  ;;  %v3079_v55 = vpack.c.bf16 %v267_v39, %v260_v33 }
  0x36   :  { %v3081_v56 = vpack.c.bf16 %v281_v60, %v274_v59  ;;  %v3083_v58 = vpack.c.bf16 %v295_v44, %v288_v41  ;;  %vm3408_vm14 = vmmov 0   ;;  %v3089_v61 = vpack.c.bf16 %v309_v43, %v302_v42 }
  0x37   :  { %v3091_v5 = vpack.c.bf16 %v323_v45, %v316_v6  ;;  %v2259_v12 = vpack.c.bf16 %v269_v31, %v262_v29  ;;  %v3093_v16 = vpack.c.bf16 %v337_v54, %v330_v46  ;;  %v276_v33 = vand.u32 4294901760, %v275_v32 }
  0x38   :  { %2251 = vmatpush3.bf16.msk.msra.mxu0 %vm3026_vm13, %v2608_v17  ;;  %2395 = vmatpush3.bf16.msk.msra.mxu1 %vm3026_vm13, %v2608_v17  ;;  %v283_v39 = vand.u32 4294901760, %v282_v38  ;;  %v289_v59 = vsub.f32 %v2981_v35, %v288_v41  ;;  %v296_v60 = vsub.f32 %v2983_v36, %v295_v44  ;;  %v310_v31 = vsub.f32 %v3037_v10, %v309_v43 }
  0x39   :  { %2252 = vmatprep.subr.bf16.mxu0 %v2605_v1  ;;  %2396 = vmatprep.subr.bf16.mxu1 %v2605_v1  ;;  %v317_v41 = vsub.f32 %v3039_v11, %v316_v6  ;;  %v324_v44 = vsub.f32 %v3041_v19, %v323_v45  ;;  %vm3409_vm7 = vnez %v3376_v30  ;;  %vm3410_vm4 = vnez %v3382_v40 }
  0x3a   :  { %v297_v29 = vand.u32 4294901760, %v296_v60  ;;  %v311_v38 = vand.u32 4294901760, %v310_v31  ;;  %v2280_v60 = vpack.c.bf16 %v2825_v50, %v2823_v49  ;;  %v2289_v49 = vpack.c.bf16 %v2983_v36, %v2981_v35 }
  0x3b   :  { %1841 = vmatmul.mubr.f32.vlgmr.msra.gmra.mrb[0].mxu0 %v223_v13  ;;  %2051 = vmatmul.mubr.f32.vlgmr.msra.gmra.mrb[0].mxu1 %v864_v18  ;;  %v303_v13 = vsub.f32 %v3003_v9, %v302_v42  ;;  %v2262_v18 = vpack.c.bf16 %v283_v39, %v276_v33  ;;  %v331_v42 = vsub.f32 %v3046_v20, %v330_v46  ;;  %v325_v33 = vand.u32 4294901760, %v324_v44 }
  0x3c   :  { %2254 = vmatpush3.bf16.msra.mxu0 %v2253_v21  ;;  %2398 = vmatpush3.bf16.msra.mxu1 %v2253_v21  ;;  %v290_v21 = vand.u32 4294901760, %v289_v59  ;;  %v338_v39 = vsub.f32 %v3051_v24, %v337_v54  ;;  %v2277_v54 = vpack.c.bf16 %v2821_v48, %v2775_v37  ;;  %v2283_v37 = vpack.c.bf16 %v2890_v8, %v2874_v62 }
  0x3d   :  { %2255 = vmatprep.subr.bf16.mxu0 %v2605_v1  ;;  %2399 = vmatprep.subr.bf16.mxu1 %v2605_v1  ;;  %v332_v45 = vand.u32 4294901760, %v331_v42  ;;  %v2286_v48 = vpack.c.bf16 %v2979_v34, %v2960_v28  ;;  %v2292_v50 = vpack.c.bf16 %v3037_v10, %v3003_v9  ;;  %v2295_v62 = vpack.c.bf16 %v3041_v19, %v3039_v11 }
  0x3e   :  { %1875 = vmatprep.mubr.msk.f32.mxu0 %vm3408_vm14, %v2607_v4  ;;  %2085 = vmatprep.mubr.msk.f32.mxu1 %vm3408_vm14, %v2607_v4  ;;  %v2265_v32 = vpack.c.bf16 %v297_v29, %v290_v21  ;;  %v339_v59 = vand.u32 4294901760, %v338_v39  ;;  %v2298_v8 = vpack.c.bf16 %v3051_v24, %v3046_v20  ;;  %vm1459_vm9 = vcmask 25600  }
  0x3f   :  { %vm1471_vm12 = vcmp.eq.s32.totalorder %v2646_v3, 0 }
  0x40   :  { %2257 = vmatpush3.bf16.msra.mxu0 %v2256_v27  ;;  %2401 = vmatpush3.bf16.msra.mxu1 %v2256_v27  ;;  %v304_v27 = vand.u32 4294901760, %v303_v13  ;;  %v2274_v46 = vpack.c.bf16 %v339_v59, %v332_v45 }
  0x41   :  { %2258 = vmatprep.subr.bf16.mxu0 %v2605_v1  ;;  %2402 = vmatprep.subr.bf16.mxu1 %v2605_v1 }
  0x42   :  { %v2268_v43 = vpack.c.bf16 %v311_v38, %v304_v27 }
  0x44   :  { %2260 = vmatpush3.bf16.msra.mxu0 %v2259_v12  ;;  %2404 = vmatpush3.bf16.msra.mxu1 %v2259_v12  ;;  %v318_v12 = vand.u32 4294901760, %v317_v41 }
  0x45   :  { %2261 = vmatprep.subr.bf16.mxu0 %v2605_v1  ;;  %2405 = vmatprep.subr.bf16.mxu1 %v2605_v1 }
  0x46   :  { %v2271_v6 = vpack.c.bf16 %v325_v33, %v318_v12 }
  0x48   :  { %2263 = vmatpush3.bf16.msra.mxu0 %v2262_v18  ;;  %2407 = vmatpush3.bf16.msra.mxu1 %v2262_v18 }
  0x49   :  { %2264 = vmatprep.subr.bf16.mxu0 %v2605_v1  ;;  %2408 = vmatprep.subr.bf16.mxu1 %v2605_v1 }
  0x4c   :  { %2266 = vmatpush3.bf16.msra.mxu0 %v2265_v32  ;;  %2410 = vmatpush3.bf16.msra.mxu1 %v2265_v32 }
  0x4d   :  { %2267 = vmatprep.subr.bf16.mxu0 %v2605_v1  ;;  %2411 = vmatprep.subr.bf16.mxu1 %v2605_v1 }
  0x50   :  { %2269 = vmatpush3.bf16.msra.mxu0 %v2268_v43  ;;  %2413 = vmatpush3.bf16.msra.mxu1 %v2268_v43 }
  0x51   :  { %2270 = vmatprep.subr.bf16.mxu0 %v2605_v1  ;;  %2414 = vmatprep.subr.bf16.mxu1 %v2605_v1 }
  0x54   :  { %2272 = vmatpush3.bf16.msra.mxu0 %v2271_v6  ;;  %2416 = vmatpush3.bf16.msra.mxu1 %v2271_v6 }
  0x55   :  { %2273 = vmatprep.subr.bf16.mxu0 %v2605_v1  ;;  %2417 = vmatprep.subr.bf16.mxu1 %v2605_v1 }
  0x58   :  { %2275 = vmatpush3.bf16.msra.mxu0 %v2274_v46  ;;  %2419 = vmatpush3.bf16.msra.mxu1 %v2274_v46 }
  0x59   :  { %2276 = vmatprep.subr.bf16.mxu0 %v2605_v1  ;;  %2420 = vmatprep.subr.bf16.mxu1 %v2605_v1 }
  0x5b   :  { %1876 = vmatmul.mubr.f32.vlgmr.msra.gmra.mrb[0].mxu0 %v2854_v57  ;;  %2086 = vmatmul.mubr.f32.vlgmr.msra.gmra.mrb[0].mxu1 %v2888_v7 }
  0x5c   :  { %2278 = vmatpush3.bf16.msra.mxu0 %v2277_v54  ;;  %2422 = vmatpush3.bf16.msra.mxu1 %v2277_v54 }
  0x5d   :  { %2279 = vmatprep.subr.bf16.mxu0 %v2605_v1  ;;  %2423 = vmatprep.subr.bf16.mxu1 %v2605_v1 }
  0x5e   :  { %1910 = vmatprep.mubr.msk.f32.mxu0 %vm3408_vm14, %v2607_v4  ;;  %2120 = vmatprep.mubr.msk.f32.mxu1 %vm3408_vm14, %v2607_v4 }
  0x60   :  { %2281 = vmatpush3.bf16.msra.mxu0 %v2280_v60  ;;  %2425 = vmatpush3.bf16.msra.mxu1 %v2280_v60 }
  0x61   :  { %2282 = vmatprep.subr.bf16.mxu0 %v2605_v1  ;;  %2426 = vmatprep.subr.bf16.mxu1 %v2605_v1 }
  0x64   :  { %2284 = vmatpush3.bf16.msra.mxu0 %v2283_v37  ;;  %2428 = vmatpush3.bf16.msra.mxu1 %v2283_v37 }
  0x65   :  { %2285 = vmatprep.subr.bf16.mxu0 %v2605_v1  ;;  %2429 = vmatprep.subr.bf16.mxu1 %v2605_v1 }
  0x68   :  { %2287 = vmatpush3.bf16.msra.mxu0 %v2286_v48  ;;  %2431 = vmatpush3.bf16.msra.mxu1 %v2286_v48 }
  0x69   :  { %2288 = vmatprep.subr.bf16.mxu0 %v2605_v1  ;;  %2432 = vmatprep.subr.bf16.mxu1 %v2605_v1 }
  0x6c   :  { %2290 = vmatpush3.bf16.msra.mxu0 %v2289_v49  ;;  %2434 = vmatpush3.bf16.msra.mxu1 %v2289_v49 }
  0x6d   :  { %2291 = vmatprep.subr.bf16.mxu0 %v2605_v1  ;;  %2435 = vmatprep.subr.bf16.mxu1 %v2605_v1 }
  0x70   :  { %2293 = vmatpush3.bf16.msra.mxu0 %v2292_v50  ;;  %2437 = vmatpush3.bf16.msra.mxu1 %v2292_v50 }
  0x71   :  { %2294 = vmatprep.subr.bf16.mxu0 %v2605_v1  ;;  %2438 = vmatprep.subr.bf16.mxu1 %v2605_v1 }
  0x74   :  { %2296 = vmatpush3.bf16.msra.mxu0 %v2295_v62  ;;  %2440 = vmatpush3.bf16.msra.mxu1 %v2295_v62 }
  0x75   :  { %2297 = vmatprep.subr.bf16.mxu0 %v2605_v1  ;;  %2441 = vmatprep.subr.bf16.mxu1 %v2605_v1 }
  0x78   :  { %2299 = vmatpush3.bf16.msra.mxu0 %v2298_v8  ;;  %2443 = vmatpush3.bf16.msra.mxu1 %v2298_v8 }
  0x79   :  { %2300 = vmatprep.subr.bf16.mxu0 %v2605_v1  ;;  %2444 = vmatprep.subr.bf16.mxu1 %v2605_v1 }
  0x7b   :  { %1911 = vmatmul.mubr.f32.vlgmr.msra.gmra.mrb[0].mxu0 %v2885_v0  ;;  %2121 = vmatmul.mubr.f32.vlgmr.msra.gmra.mrb[0].mxu1 %v2922_v14 }
  0x7c   :  { %2302 = vmatpush3.bf16.msk.msra.mxu0 %vm2685_vm11, %v2608_v17  ;;  %2446 = vmatpush3.bf16.msk.msra.mxu1 %vm2685_vm11, %v2608_v17 }
  0x7d   :  { %2303 = vmatprep.subr.bf16.mxu0 %v2605_v1  ;;  %2447 = vmatprep.subr.bf16.mxu1 %v2605_v1 }
  0x7e   :  { %1945 = vmatprep.mubr.msk.f32.mxu0 %vm3408_vm14, %v2607_v4  ;;  %2155 = vmatprep.mubr.msk.f32.mxu1 %vm3408_vm14, %v2607_v4 }
  0x80   :  { %2305 = vmatpush3.bf16.msk.msra.mxu0 %vm2718_vm3, %v2608_v17  ;;  %2449 = vmatpush3.bf16.msk.msra.mxu1 %vm2718_vm3, %v2608_v17 }
  0x81   :  { %2306 = vmatprep.subr.bf16.mxu0 %v2605_v1  ;;  %2450 = vmatprep.subr.bf16.mxu1 %v2605_v1 }
  0x84   :  { %2308 = vmatpush3.bf16.msk.msra.mxu0 %vm3409_vm7, %v2608_v17  ;;  %2452 = vmatpush3.bf16.msk.msra.mxu1 %vm3409_vm7, %v2608_v17 }
  0x85   :  { %2309 = vmatprep.subr.bf16.mxu0 %v2605_v1  ;;  %2453 = vmatprep.subr.bf16.mxu1 %v2605_v1 }
  0x88   :  { %2311 = vmatpush3.bf16.msk.msra.mxu0 %vm3410_vm4, %v2608_v17  ;;  %2455 = vmatpush3.bf16.msk.msra.mxu1 %vm3410_vm4, %v2608_v17 }
  0x89   :  { %2312 = vmatprep.subr.bf16.mxu0 %v2605_v1  ;;  %2456 = vmatprep.subr.bf16.mxu1 %v2605_v1 }
  0x8c   :  { %2314 = vmatpush3.bf16.msk.msra.mxu0 %vm2831_vm6, %v2608_v17  ;;  %2458 = vmatpush3.bf16.msk.msra.mxu1 %vm2831_vm6, %v2608_v17 }
  0x8d   :  { %2315 = vmatprep.subr.bf16.mxu0 %v2605_v1  ;;  %2459 = vmatprep.subr.bf16.mxu1 %v2605_v1 }
  0x90   :  { %2317 = vmatpush3.bf16.msk.msra.mxu0 %vm2880_vm5, %v2608_v17  ;;  %2461 = vmatpush3.bf16.msk.msra.mxu1 %vm2880_vm5, %v2608_v17 }
  0x91   :  { %2318 = vmatprep.subr.bf16.mxu0 %v2605_v1  ;;  %2462 = vmatprep.subr.bf16.mxu1 %v2605_v1 }
  0x94   :  { %2320 = vmatpush3.bf16.msk.msra.mxu0 %vm2953_vm0, %v2608_v17  ;;  %2464 = vmatpush3.bf16.msk.msra.mxu1 %vm2953_vm0, %v2608_v17 }
  0x95   :  { %2321 = vmatprep.subr.bf16.mxu0 %v2605_v1  ;;  %2465 = vmatprep.subr.bf16.mxu1 %v2605_v1 }
  0x98   :  { %2323 = vmatpush3.bf16.msk.msra.mxu0 %vm3026_vm13, %v2608_v17  ;;  %2467 = vmatpush3.bf16.msk.msra.mxu1 %vm3026_vm13, %v2608_v17 }
  0x99   :  { %2324 = vmatprep.subr.bf16.mxu0 %v2605_v1  ;;  %2468 = vmatprep.subr.bf16.mxu1 %v2605_v1 }
  0x9b   :  { %1946 = vmatmul.mubr.f32.vlgmr.msra.gmra.mrb[0].mxu0 %v221_v22  ;;  %2156 = vmatmul.mubr.f32.vlgmr.msra.gmra.mrb[0].mxu1 %v862_v25 }
  0x9c   :  { %2326 = vmatpush3.bf16.msra.mxu0 %v3068_v47  ;;  %2470 = vmatpush3.bf16.msra.mxu1 %v3068_v47 }
  0x9d   :  { %2327 = vmatprep.subr.bf16.mxu0 %v2605_v1  ;;  %2471 = vmatprep.subr.bf16.mxu1 %v2605_v1 }
  0x9e   :  { %1980 = vmatprep.mubr.msk.f32.mxu0 %vm3408_vm14, %v2607_v4  ;;  %2190 = vmatprep.mubr.msk.f32.mxu1 %vm3408_vm14, %v2607_v4 }
  0xa0   :  { %2329 = vmatpush3.bf16.msra.mxu0 %v3074_v52  ;;  %2473 = vmatpush3.bf16.msra.mxu1 %v3074_v52 }
  0xa1   :  { %2330 = vmatprep.subr.bf16.mxu0 %v2605_v1  ;;  %2474 = vmatprep.subr.bf16.mxu1 %v2605_v1 }
  0xa4   :  { %2332 = vmatpush3.bf16.msra.mxu0 %v3079_v55  ;;  %2476 = vmatpush3.bf16.msra.mxu1 %v3079_v55 }
  0xa5   :  { %2333 = vmatprep.subr.bf16.mxu0 %v2605_v1  ;;  %2477 = vmatprep.subr.bf16.mxu1 %v2605_v1 }
  0xa8   :  { %2335 = vmatpush3.bf16.msra.mxu0 %v3081_v56  ;;  %2479 = vmatpush3.bf16.msra.mxu1 %v3081_v56 }
  0xa9   :  { %2336 = vmatprep.subr.bf16.mxu0 %v2605_v1  ;;  %2480 = vmatprep.subr.bf16.mxu1 %v2605_v1 }
  0xac   :  { %2338 = vmatpush3.bf16.msra.mxu0 %v3083_v58  ;;  %2482 = vmatpush3.bf16.msra.mxu1 %v3083_v58 }
  0xad   :  { %2339 = vmatprep.subr.bf16.mxu0 %v2605_v1  ;;  %2483 = vmatprep.subr.bf16.mxu1 %v2605_v1 }
  0xb0   :  { %2341 = vmatpush3.bf16.msra.mxu0 %v3089_v61  ;;  %2485 = vmatpush3.bf16.msra.mxu1 %v3089_v61 }
  0xb1   :  { %2342 = vmatprep.subr.bf16.mxu0 %v2605_v1  ;;  %2486 = vmatprep.subr.bf16.mxu1 %v2605_v1 }
  0xb4   :  { %2344 = vmatpush3.bf16.msra.mxu0 %v3091_v5  ;;  %2488 = vmatpush3.bf16.msra.mxu1 %v3091_v5 }
  0xb5   :  { %2345 = vmatprep.subr.bf16.mxu0 %v2605_v1  ;;  %2489 = vmatprep.subr.bf16.mxu1 %v2605_v1 }
  0xb8   :  { %2347 = vmatpush3.bf16.msra.mxu0 %v3093_v16  ;;  %2491 = vmatpush3.bf16.msra.mxu1 %v3093_v16 }
  0xb9   :  { %2348 = vmatprep.subr.bf16.mxu0 %v2605_v1  ;;  %2492 = vmatprep.subr.bf16.mxu1 %v2605_v1 }
  0xbb   :  { %1981 = vmatmul.mubr.f32.vlgmr.msra.gmra.mrb[0].mxu0 %v2854_v57  ;;  %2191 = vmatmul.mubr.f32.vlgmr.msra.gmra.mrb[0].mxu1 %v2888_v7 }
  0xbc   :  { %2350 = vmatpush3.bf16.msk.msra.mxu0 %vm2685_vm11, %v2608_v17  ;;  %2494 = vmatpush3.bf16.msk.msra.mxu1 %vm2685_vm11, %v2608_v17 }
  0xbd   :  { %2351 = vmatprep.subr.bf16.mxu0 %v2605_v1  ;;  %2495 = vmatprep.subr.bf16.mxu1 %v2605_v1 }
  0xbe   :  { %2015 = vmatprep.mubr.msk.f32.mxu0 %vm3408_vm14, %v2607_v4  ;;  %2225 = vmatprep.mubr.msk.f32.mxu1 %vm3408_vm14, %v2607_v4 }
  0xc0   :  { %2353 = vmatpush3.bf16.msk.msra.mxu0 %vm2718_vm3, %v2608_v17  ;;  %2497 = vmatpush3.bf16.msk.msra.mxu1 %vm2718_vm3, %v2608_v17 }
  0xc1   :  { %2354 = vmatprep.subr.bf16.mxu0 %v2605_v1  ;;  %2498 = vmatprep.subr.bf16.mxu1 %v2605_v1 }
  0xc4   :  { %2356 = vmatpush3.bf16.msk.msra.mxu0 %vm3409_vm7, %v2608_v17  ;;  %2500 = vmatpush3.bf16.msk.msra.mxu1 %vm3409_vm7, %v2608_v17 }
  0xc5   :  { %2357 = vmatprep.subr.bf16.mxu0 %v2605_v1  ;;  %2501 = vmatprep.subr.bf16.mxu1 %v2605_v1 }
  0xc8   :  { %2359 = vmatpush3.bf16.msk.msra.mxu0 %vm3410_vm4, %v2608_v17  ;;  %2503 = vmatpush3.bf16.msk.msra.mxu1 %vm3410_vm4, %v2608_v17 }
  0xc9   :  { %2360 = vmatprep.subr.bf16.mxu0 %v2605_v1  ;;  %2504 = vmatprep.subr.bf16.mxu1 %v2605_v1 }
  0xcc   :  { %2362 = vmatpush3.bf16.msk.msra.mxu0 %vm2831_vm6, %v2608_v17  ;;  %2506 = vmatpush3.bf16.msk.msra.mxu1 %vm2831_vm6, %v2608_v17 }
  0xcd   :  { %2363 = vmatprep.subr.bf16.mxu0 %v2605_v1  ;;  %2507 = vmatprep.subr.bf16.mxu1 %v2605_v1 }
  0xd0   :  { %2365 = vmatpush3.bf16.msk.msra.mxu0 %vm2880_vm5, %v2608_v17  ;;  %2509 = vmatpush3.bf16.msk.msra.mxu1 %vm2880_vm5, %v2608_v17 }
  0xd1   :  { %2366 = vmatprep.subr.bf16.mxu0 %v2605_v1  ;;  %2510 = vmatprep.subr.bf16.mxu1 %v2605_v1 }
  0xd4   :  { %2368 = vmatpush3.bf16.msk.msra.mxu0 %vm2953_vm0, %v2608_v17  ;;  %2512 = vmatpush3.bf16.msk.msra.mxu1 %vm2953_vm0, %v2608_v17  ;;  %vm1470_vm0 = vcmp.eq.s32.totalorder %v2644_v2, 0 }
  0xd5   :  { %2369 = vmatprep.subr.bf16.mxu0 %v2605_v1  ;;  %2513 = vmatprep.subr.bf16.mxu1 %v2605_v1  ;;  %vm1472_vm8 = vmand %vm1470_vm0, %vm1471_vm12 }
  0xd8   :  { %2371 = vmatpush3.bf16.msk.msra.mxu0 %vm3026_vm13, %v2608_v17  ;;  %2515 = vmatpush3.bf16.msk.msra.mxu1 %vm3026_vm13, %v2608_v17 }
  0xdb   :  { %2016 = vmatmul.mubr.f32.vlgmr.msra.gmra.mrb[0].mxu0 %v2854_v57  ;;  %2226 = vmatmul.mubr.f32.vlgmr.msra.gmra.mrb[0].mxu1 %v2888_v7 }
 0x1ae   :  { %v775_v4 = vpop.f32.mrb[0].mxu0  ;;  %v1416_v15 = vpop.f32.mrb[0].mxu1 }
 0x1af   :  { %2544 = vrsqrt.f32 %v775_v4  ;;  %v2017_v23 = vpop.f32.mrb[1].mxu0  ;;  %v2227_v30 = vpop.f32.mrb[1].mxu1  ;;  %vm1422_vm11 = vcmp.eq.f32.partialorder %v775_v4, inf  ;;  %v1425_v63 = vand.u32 2147483648, %v775_v4  ;;  %vm1424_vm3 = vcmp.eq.f32.partialorder %v775_v4, 0.0 }
 0x1b0   :  { %2546 = vrsqrt.f32 %v1416_v15  ;;  %vm1438_vm6 = vcmp.eq.f32.partialorder %v1416_v15, inf  ;;  %v1441_v17 = vand.u32 2147483648, %v1416_v15  ;;  %vm1440_vm5 = vcmp.eq.f32.partialorder %v1416_v15, 0.0 }
 0x1b9   :  { %v2545_v40 = vpop.eup %2544 }
 0x1ba   :  { %v2547_v1 = vpop.eup %2546  ;;  %v1421_v51 = vmul.f32 %v2545_v40, %v775_v4 }
 0x1bb   :  { %v1437_v0 = vmul.f32 %v2547_v1, %v1416_v15 }
 0x1bc   :  { %v1423_v14 = vsel %vm1422_vm11, %v775_v4, %v1421_v51 }
 0x1bd   :  { %v1426_v22 = vsel %vm1424_vm3, %v1425_v63, %v1423_v14  ;;  %v1439_v57 = vsel %vm1438_vm6, %v1416_v15, %v1437_v0 }
 0x1be   :  { %v1427_v7 = vadd.f32 1e-08, %v1426_v22  ;;  %v1442_v25 = vsel %vm1440_vm5, %v1441_v17, %v1439_v57 }
 0x1bf   :  { %v1443_v26 = vadd.f32 1e-08, %v1442_v25 }
 0x1c0   :  { %2548 = vrsqrt.f32 %v1427_v7  ;;  %vm1430_vm2 = vcmp.eq.f32.partialorder %v1427_v7, inf  ;;  %v1433_v36 = vand.u32 2147483648, %v1427_v7  ;;  %vm1432_vm1 = vcmp.eq.f32.partialorder %v1427_v7, 0.0 }
 0x1c1   :  { %2550 = vrsqrt.f32 %v1443_v26  ;;  %vm1446_vm15 = vcmp.eq.f32.partialorder %v1443_v26, inf  ;;  %v1449_v10 = vand.u32 2147483648, %v1443_v26  ;;  %vm1448_vm10 = vcmp.eq.f32.partialorder %v1443_v26, 0.0 }
 0x1ca   :  { %v2549_v28 = vpop.eup %2548 }
 0x1cb   :  { %v2551_v34 = vpop.eup %2550  ;;  %v1429_v35 = vmul.f32 %v2549_v28, %v1427_v7 }
 0x1cc   :  { %v1445_v9 = vmul.f32 %v2551_v34, %v1443_v26 }
 0x1cd   :  { %v1431_v53 = vsel %vm1430_vm2, %v1427_v7, %v1429_v35 }
 0x1ce   :  { %v1434_v11 = vsel %vm1432_vm1, %v1433_v36, %v1431_v53  ;;  %v1447_v19 = vsel %vm1446_vm15, %v1443_v26, %v1445_v9 }
 0x1cf   :  { %v1435_v20 = vmin.f32 %v1434_v11, 10.0  ;;  %v1450_v24 = vsel %vm1448_vm10, %v1449_v10, %v1447_v19 }
 0x1d0   :  { %v1451_v47 = vmin.f32 %v1450_v24, 10.0 }
 0x1d2   :  { %v1452_v52 = vsub.f32 %v1435_v20, %v1451_v47 }
 0x1d4   :  { %v1603_v55 = vmul.f32 -1.442695, %v1452_v52 }
 0x1d6   :  { %2552 = vpow2.f32 %v1603_v55 }
 0x1e0   :  { %v2553_v56 = vpop.eup %2552 }
 0x1e1   :  { %v1456_v58 = vadd.f32 1.0, %v2553_v56 }
 0x1e3   :  { %2554 = vrcp.f32 %v1456_v58 }
 0x1ed   :  { %v2555_v61 = vpop.eup %2554 }
 0x1ee   :  { %v1460_v5 = vsel %vm1459_vm9, %v2555_v61, 0.0 }
 0x1ef   :  { %1461 = vadd.xlane.f32.xlu0 %v1460_v5 }
 0x27c   :  { %v1462_v16 = vpop.xlane.xlu0 %1461 }
 0x27d   :  { %v1463_v13 = vrot.slane %v1462_v16, 4 }
 0x27f   :  { %v1464_v18 = vadd.f32 %v1463_v13, %v1462_v16 }
 0x281   :  { %v1465_v21 = vrot.slane %v1464_v18, 2 }
 0x283   :  { %v1466_v29 = vadd.f32 %v1465_v21, %v1464_v18 }
 0x285   :  { %v1467_v31 = vrot.slane %v1466_v29, 1 }
 0x287   :  { %v1468_v27 = vadd.f32 %v1467_v31, %v1466_v29 }
 0x289   :  { %2536 = vpush %v1468_v27 }
 0x2ba   :  { %s2537_s27 = spop %2536 }
 0x2bb   :  { %v1473_v32 = vstv %s2537_s27 }
 0x2bc   :  { %v1474_v38 = vsel %vm1472_vm8, %v1473_v32, 0.0 }
 0x2bd   :  { %1475 = vst [vmem:[#allocation5] sm:$0xff] %v1474_v38 }
 0x2be   :  { %2589 = shalt.err (!%p2586_p12)
}
 0x2bf   :  { %s2590_s4 = scalar_lea.hbm %s3352_s3, 128 }
 0x2c0   :  { %p2591_p13 = scmp.ne.s32.totalorder %s3352_s3, %s2590_s4  ;;  %p2594_p0 = scmp.lt.u32.totalorder %s2590_s4, %s3352_s3 }
 0x2c2   :  { %p2596_p1 = pnand %p2594_p0, %p2591_p13 }
 0x2c4   :  { %2599 = shalt.err (!%p2596_p1)
}
 0x2c5   :  { %1485 = dma.vmem_to_hbm [thread:$0]  %s1483_s26, 128, %s3352_s3, [#allocation4]  }
 0x2c6   :  { %2602 = dma.done.wait [#allocation4], 128  }
 0x2c7   :  { %2603 = vsyncadd [#allocation4], 4294967168 }
 0x2c8   :  { %1489 = vsyncpa [#allocation3], 1 }
 0x2c9   :  { %1490 = vsyncpa [#allocation4], 1 }

</bundles_post_ra>
